<compile_context>
chip_gen: v5e
topology: v5e:2x2
jax: 0.10.0
libtpu: 0.0.40
codegen_flags: <defaults>
</compile_context>

<pallas_src>
import jax
import jax.numpy as jnp
from jax.experimental import pallas as pl
from jax.experimental.pallas import tpu as pltpu


def _conv_stats_kernel(p_ref, w_ref, conv_ref, stat_ref):
    """One image: conv3x3 as a single MXU matmul + BN partial statistics.

    p_ref   : (1, 9*Cin, H*W) bf16  pre-im2col'd patches (rows ordered (dy, dx, ci))
    w_ref   : (Cout, 9*Cin)   bf16  conv weight (columns ordered (dy, dx, ci))
    conv_ref: (1, Cout, H*W)  f32   conv output, lane-dense; == flattened NCHW
    stat_ref: (1, Cout, 2)    f32   per-image per-channel [sum, sum_sq]
    """
    # Lane-dense result straight out of the MXU (f32 accumulate). No transpose.
    c = jnp.dot(w_ref[...], p_ref[0], preferred_element_type=jnp.float32)  # (Cout, H*W)
    conv_ref[0] = c

    # BN partials from the already-final-layout accumulator (XLU cross-lane reduce).
    s1 = jnp.sum(c, axis=1, keepdims=True)        # (Cout, 1)
    s2 = jnp.sum(c * c, axis=1, keepdims=True)    # (Cout, 1)
    stat_ref[0] = jnp.concatenate([s1, s2], axis=1)


@jax.jit
def basic_block_forward(x_nchw, w_oihw, gamma, beta):
    """conv3x3(stride=1, pad=1, bias=False) -> BatchNorm2d(batch stats) -> ReLU.

    x_nchw: (N, Cin, H, W) f32, w_oihw: (Cout, Cin, 3, 3) f32.
    Returns (N, Cout, H, W) f32.
    """
    eps = 1e-5
    n, cin, h, w = x_nchw.shape
    cout = w_oihw.shape[0]
    hw = h * w
    k = 9 * cin

    # --- XLA glue: im2col on the tiny Cin-wide input (layout plumbing) ---
    x_pad = jnp.pad(x_nchw, ((0, 0), (0, 0), (1, 1), (1, 1)))          # (N, Cin, H+2, W+2)
    taps = [x_pad[:, :, dy:dy + h, dx:dx + w]                          # 9 x (N, Cin, H, W)
            for dy in range(3) for dx in range(3)]
    patches = (jnp.stack(taps, axis=1)                                 # (N, 9, Cin, H, W)
               .reshape(n, k, hw).astype(jnp.bfloat16))                # rows = (dy, dx, ci)
    w_mat = (jnp.transpose(w_oihw, (0, 2, 3, 1))                       # (Cout, 3, 3, Cin)
             .reshape(cout, k).astype(jnp.bfloat16))                   # cols = (dy, dx, ci)

    # --- single Pallas pass: conv (one MXU matmul per image) + BN partials ---
    conv_out, stats = pl.pallas_call(
        _conv_stats_kernel,
        grid=(n,),
        in_specs=[
            pl.BlockSpec((1, k, hw), lambda i: (i, 0, 0)),
            pl.BlockSpec((cout, k), lambda i: (0, 0)),
        ],
        out_specs=(
            pl.BlockSpec((1, cout, hw), lambda i: (i, 0, 0)),
            pl.BlockSpec((1, cout, 2), lambda i: (i, 0, 0)),
        ),
        out_shape=(
            jax.ShapeDtypeStruct((n, cout, hw), jnp.float32),
            jax.ShapeDtypeStruct((n, cout, 2), jnp.float32),
        ),
        compiler_params=pltpu.CompilerParams(
            dimension_semantics=("parallel",),
        ),
    )(patches, w_mat)

    # --- fused XLA epilogue: tiny cross-image stats reduce, fold BN, FMA + ReLU ---
    # TODO(synk): BatchNorm2d running_mean/running_var buffer updates are not
    # emitted (only the forward output of the reference module is produced).
    count = jnp.float32(n * hw)
    s = jnp.sum(stats, axis=0)                                   # (Cout, 2)
    mean = s[:, 0] / count
    # E[x^2] - E[x]^2 in f32; fine at these scales, clamp guards tiny negatives.
    var = jnp.maximum(s[:, 1] / count - mean * mean, 0.0)
    scale = gamma.astype(jnp.float32) * jax.lax.rsqrt(var + eps)
    bias = beta.astype(jnp.float32) - mean * scale

    # conv_out is already flattened NCHW (N, Cout, H*W): no transpose needed,
    # so the FMA + ReLU fuses into this single elementwise pass.
    y = conv_out * scale[None, :, None] + bias[None, :, None]
    return jnp.maximum(y, 0.0).reshape(n, cout, h, w)


def _reference(x, w, gamma, beta, eps=1e-5):
    """Pure-JAX f32 reference matching the PyTorch module forward."""
    conv = jax.lax.conv_general_dilated(
        x, w, window_strides=(1, 1), padding=((1, 1), (1, 1)),
        dimension_numbers=("NCHW", "OIHW", "NCHW"))
    mean = jnp.mean(conv, axis=(0, 2, 3), keepdims=True)
    var = jnp.mean((conv - mean) ** 2, axis=(0, 2, 3), keepdims=True)
    y = (conv - mean) * jax.lax.rsqrt(var + eps)
    y = y * gamma.reshape(1, -1, 1, 1) + beta.reshape(1, -1, 1, 1)
    return jnp.maximum(y, 0.0)


if __name__ == "__main__":
    # Small shapes consistent with BasicBlock(in_planes=4, planes=8)
    N, Cin, H, W = 2, 4, 16, 16
    Cout = 8

    key = jax.random.PRNGKey(0)
    kx, kw, kg, kb = jax.random.split(key, 4)
    x = jax.random.normal(kx, (N, Cin, H, W), dtype=jnp.float32)
    conv_w = 0.1 * jax.random.normal(kw, (Cout, Cin, 3, 3), dtype=jnp.float32)
    bn_gamma = 1.0 + 0.1 * jax.random.normal(kg, (Cout,), dtype=jnp.float32)
    bn_beta = 0.1 * jax.random.normal(kb, (Cout,), dtype=jnp.float32)

    out = basic_block_forward(x, conv_w, bn_gamma, bn_beta)
    jax.block_until_ready(out)

    assert out.shape == (N, Cout, H, W)
    assert bool(jnp.all(out >= 0.0))              # ReLU sanity

    ref = _reference(x, conv_w, bn_gamma, bn_beta)
    max_err = float(jnp.max(jnp.abs(out - ref)))
    # bf16 MXU operands (f32 accumulation) vs a pure-f32 reference.
    assert max_err < 5e-2, f"max abs error vs reference: {max_err}"

    print("KERNEL_OK")
</pallas_src>

<mosaic_0001>
module attributes {stable_mosaic.version = 11 : i64} {
  func.func @_conv_stats_kernel(%arg0: i32, %arg1: memref<1x36x256xbf16, #tpu.memory_space<vmem>>, %arg2: memref<8x36xbf16, #tpu.memory_space<vmem>>, %arg3: memref<1x8x256xf32, #tpu.memory_space<vmem>>, %arg4: memref<1x8x2xf32, #tpu.memory_space<vmem>>) attributes {dimension_semantics = [#tpu.dimension_semantics<parallel>], iteration_bounds = array<i64: 2>, scalar_prefetch = 0 : i64, scratch_operands = 0 : i64, tpu.core_type = #tpu.core_type<tc>, window_params = [{transform_indices = @transform_0, window_bounds = array<i64: 1, 36, 256>}, {pipeline_mode = #tpu.pipeline_mode<synchronous>, transform_indices = @transform_1, window_bounds = array<i64: 8, 36>}, {transform_indices = @transform_2, window_bounds = array<i64: 1, 8, 256>}, {transform_indices = @transform_3, window_bounds = array<i64: 1, 8, 2>}]} {
    %c0 = arith.constant 0 : index
    %c0_0 = arith.constant 0 : index
    %0 = vector.load %arg2[%c0, %c0_0] : memref<8x36xbf16, #tpu.memory_space<vmem>>, vector<8x36xbf16>
    %c0_1 = arith.constant 0 : index
    %c0_2 = arith.constant 0 : index
    %c0_3 = arith.constant 0 : index
    %1 = vector.load %arg1[%c0_1, %c0_2, %c0_3] : memref<1x36x256xbf16, #tpu.memory_space<vmem>>, vector<1x36x256xbf16>
    %2 = vector.shape_cast %1 : vector<1x36x256xbf16> to vector<36x256xbf16>
    %cst = arith.constant dense<0.000000e+00> : vector<8x256xf32>
    %3 = tpu.matmul %0, %2, %cst {dimension_numbers = #tpu.dot_dimension_numbers<[1], [0], [0], [1], [0, 0, 1, 1], [], []>} : vector<8x36xbf16>, vector<36x256xbf16>, vector<8x256xf32> -> vector<8x256xf32>
    %c0_4 = arith.constant 0 : index
    %c0_5 = arith.constant 0 : index
    %c0_6 = arith.constant 0 : index
    %4 = vector.load %arg3[%c0_4, %c0_5, %c0_6] : memref<1x8x256xf32, #tpu.memory_space<vmem>>, vector<1x8x256xf32>
    %5 = vector.shape_cast %4 : vector<1x8x256xf32> to vector<8x256xf32>
    %6 = vector.shape_cast %3 : vector<8x256xf32> to vector<1x8x256xf32>
    tpu.vector_store %arg3[%c0_4, %c0_5, %c0_6], %6 {strides = array<i32>} : memref<1x8x256xf32, #tpu.memory_space<vmem>>, vector<1x8x256xf32>,
    %cst_7 = arith.constant dense<0.000000e+00> : vector<8xf32>
    %7 = vector.multi_reduction <add>, %3, %cst_7 [1] : vector<8x256xf32> to vector<8xf32>
    %8 = vector.shape_cast %7 : vector<8xf32> to vector<8x1xf32>
    %9 = arith.mulf %3, %3 : vector<8x256xf32>
    %cst_8 = arith.constant dense<0.000000e+00> : vector<8xf32>
    %10 = vector.multi_reduction <add>, %9, %cst_8 [1] : vector<8x256xf32> to vector<8xf32>
    %11 = vector.shape_cast %10 : vector<8xf32> to vector<8x1xf32>
    %12 = tpu.concatenate %8, %11 in 1 : vector<8x1xf32>, vector<8x1xf32> -> vector<8x2xf32>
    %c0_9 = arith.constant 0 : index
    %c0_10 = arith.constant 0 : index
    %c0_11 = arith.constant 0 : index
    %13 = vector.load %arg4[%c0_9, %c0_10, %c0_11] : memref<1x8x2xf32, #tpu.memory_space<vmem>>, vector<1x8x2xf32>
    %14 = vector.shape_cast %13 : vector<1x8x2xf32> to vector<8x2xf32>
    %15 = vector.shape_cast %12 : vector<8x2xf32> to vector<1x8x2xf32>
    tpu.vector_store %arg4[%c0_9, %c0_10, %c0_11], %15 {strides = array<i32>} : memref<1x8x2xf32, #tpu.memory_space<vmem>>, vector<1x8x2xf32>,
    return
  }
  func.func @transform_0(%arg0: i32) -> (i32, i32, i32) {
    %c0_i32 = arith.constant 0 : i32
    %c0_i32_0 = arith.constant 0 : i32
    %c0_i32_1 = arith.constant 0 : i32
    return %arg0, %c0_i32, %c0_i32_0 : i32, i32, i32
  }
  func.func @transform_1(%arg0: i32) -> (i32, i32) {
    %c0_i32 = arith.constant 0 : i32
    %c0_i32_0 = arith.constant 0 : i32
    %c0_i32_1 = arith.constant 0 : i32
    return %c0_i32, %c0_i32_0 : i32, i32
  }
  func.func @transform_2(%arg0: i32) -> (i32, i32, i32) {
    %c0_i32 = arith.constant 0 : i32
    %c0_i32_0 = arith.constant 0 : i32
    %c0_i32_1 = arith.constant 0 : i32
    return %arg0, %c0_i32, %c0_i32_0 : i32, i32, i32
  }
  func.func @transform_3(%arg0: i32) -> (i32, i32, i32) {
    %c0_i32 = arith.constant 0 : i32
    %c0_i32_0 = arith.constant 0 : i32
    %c0_i32_1 = arith.constant 0 : i32
    return %arg0, %c0_i32, %c0_i32_0 : i32, i32, i32
  }
}

</mosaic_0001>

<bundles_post_ra>
// kernel: basic_block_forward.1
= control target key start
LH: loop header
LB: loop body
LE: loop exit
PB: predicated region body
PF: predicated region fallthrough
CT: control target
= control target key end

     0   :  { %s422_s12 = smov 0   ;;  %s450_s0 = inlined_call_operand.vmem [shape: bf16[2,36,256], index: 0, kind: input, shape index: {}]   ;;  %s451_s1 = inlined_call_operand.vmem [shape: bf16[8,36], index: 1, kind: input, shape index: {}]   ;;  %s452_s2 = inlined_call_operand.vmem [shape: f32[2,8,256], index: 2, kind: output, shape index: {0}]   ;;  %s453_s3 = inlined_call_operand.vmem [shape: f32[2,8,2], index: 3, kind: output, shape index: {1}]  }
   0x1 LB: > { %s351_s13 = sadd.s32 4294967295, %s400_s12   ;;  %p355_p0 = scmp.ge.s32.totalorder %s400_s12, 1  ;;  %s400_s12 = sphi %s422_s12, %s14_s12  }
   0x2   : > { %p140_p1 = scmp.lt.s32.totalorder %s400_s12, 3 }
   0x4   : > { %p141_p2 = pnand %p355_p0, %p140_p1 }
   0x5   : > { %p168_p3 = scmp.lt.s32.totalorder (!%p141_p2), %s351_s13, 1 }
   0x6   : > { %144 = sbr.rel (%p141_p2) target bundleno = 286 (0x11e), region = 28 }
   0xb   : > { %s455_s13 = smov (!%p168_p3, %s351_s13), 1  ;;  %vm218_vm0 = vcmask 1041408   ;;  %v183_v19 = vld [vmem:[%s451_s1] sm:$0xf]  ;;  %vm214_vm1 = vcmask 293888   ;;  %vm261_vm2 = vcmask 7168  }
   0xc   : > { %s385_s14 = smul.u32 40, %s455_s13  ;;  %s380_s20 = sshll.u32 %s455_s13, 4  ;;  %vm263_vm3 = vcmask 15360  }
   0xd   : > { %s177_s23 = scalar_lea.vmem %s452_s2, %s380_s20  ;;  %s359_s24 = sshll.u32 %s455_s13, 3 }
   0xe   : > { %s172_s17 = scalar_lea.vmem %s450_s0, %s385_s14  ;;  %s181_s27 = scalar_lea.vmem %s453_s3, %s359_s24 }
   0xf   : > { %v188_v0 = vld [vmem:[%s172_s17 + $0x20] sm:$0x33]  ;;  %v370_v3 = vld [vmem:[%s172_s17 + $0x10] sm:$0xf]  ;;  %v384_v6 = vld [vmem:[%s172_s17 + $0x14] sm:$0xf0] }
  0x10   : > { %v202_v1 = vunpack.c.l.b16 %v188_v0  ;;  %v203_v2 = vunpack.c.h.b16 %v188_v0  ;;  %v383_v7 = vld [vmem:[%s172_s17 + $0x14] sm:$0xf]  ;;  %v372_v8 = vld [vmem:[%s172_s17 + $0x18] sm:$0xf0]  ;;  %v371_v11 = vor.u32 %v384_v6, %v370_v3  ;;  %v362_v13 = vld [vmem:[%s172_s17] sm:$0xf] }
  0x11   : > { %v375_v12 = vor.u32 %v383_v7, %v372_v8  ;;  %v382_v14 = vld [vmem:[%s172_s17 + $0x4] sm:$0xf0]  ;;  %v381_v15 = vld [vmem:[%s172_s17 + $0x4] sm:$0xf]  ;;  %v364_v16 = vld [vmem:[%s172_s17 + $0x8] sm:$0xf0] }
  0x12   : > { %v208_v4 = vpack.c.b16 %v202_v1, %v202_v1  ;;  %v209_v5 = vpack.c.b16 %v203_v2, %v203_v2  ;;  %v363_v17 = vor.u32 %v382_v14, %v362_v13  ;;  %v367_v18 = vor.u32 %v381_v15, %v364_v16 }
  0x14   : > { %v220_v9 = vsel %vm218_vm0, %v208_v4, 0  ;;  %v223_v10 = vsel %vm218_vm0, %v209_v5, 0 }
  0x15   : > { %230 = vmatpush.bf16.msra.mxu0 %v220_v9  ;;  %243 = vmatpush.bf16.msra.mxu1 %v223_v10 }
  0x19   : > { %231 = vmatpush.bf16.msra.mxu0 %v371_v11  ;;  %244 = vmatpush.bf16.msra.mxu1 %v375_v12 }
  0x1d   : > { %232 = vmatpush.bf16.msra.mxu0 %v363_v17  ;;  %245 = vmatpush.bf16.msra.mxu1 %v367_v18 }
  0x20   : > { %376 = vmatmul.msk.bf16.vlgmr.msra.gmra.mxu0 %vm214_vm1, %v183_v19  ;;  %377 = vmatmul.msk.bf16.vlgmr.msra.gmra.mxu1 %vm214_vm1, %v183_v19 }
  0x9d   : > { %v234_v20 = vpop.f32.mrf.mxu0  ;;  %v247_v21 = vpop.f32.mrf.mxu1 }
  0x9e   : > { %251 = vst [vmem:[%s177_s23] sm:$0xff] %v234_v20  ;;  %v253_v22 = vadd.f32 %v247_v21, %v234_v20  ;;  %v256_v23 = vmul.f32 %v234_v20, %v234_v20  ;;  %v257_v24 = vmul.f32 %v247_v21, %v247_v21 }
  0x9f   : > { %252 = vst [vmem:[%s177_s23 + $0x8] sm:$0xff] %v247_v21 }
  0xa0   : > { %254 = vadd.xlane.f32.xlu0 %v253_v22  ;;  %v258_v27 = vadd.f32 %v257_v24, %v256_v23 }
  0xa5   : > { %v236_v25 = vpop.f32.mrf.mxu0  ;;  %v249_v26 = vpop.f32.mrf.mxu1 }
  0xa8   : > { %259 = vadd.xlane.f32.xlu0 %v258_v27 }
 0x113   : > { %v255_v28 = vpop.xlane.xlu0 %254 }
 0x11b   : > { %v260_v29 = vpop.xlane.xlu0 %259 }
 0x11c   : > { %v262_v30 = vsel %vm261_vm2, %v255_v28, %v260_v29 }
 0x11d   : > { %264 = vst.msk [vmem:[%s181_s27] sm:$0xff] %vm263_vm3, %v262_v30 }
 0x11e PF: > { %s14_s12 = sadd.s32 1, %s400_s12  }
 0x11f   : > { %p11_p4 = scmp.ge.s32.totalorder %s14_s12, 4  }
 0x121   :  { %13 = sbr.rel (!%p11_p4) target bundleno = 1 (0x1), region = 70 }

</bundles_post_ra>
